<compile_context>
chip_gen: v7x
topology: tpu7x:2x2x1
jax: 0.10.0
libtpu: 0.0.40
codegen_flags: <defaults>
</compile_context>

<pallas_src>
import functools
import math

import jax
import jax.numpy as jnp
from jax.experimental import pallas as pl
from jax.experimental.pallas import tpu as pltpu


def _leaky_relu(v, slope):
    return jnp.where(v >= 0, v, slope * v)


# --------------------------- in-kernel helpers -------------------------------

def _project_heads(h, wg_ref, attcat_ref, xp_ref, asrc_ref, adst_ref, heads):
    """GATConv source projection + attention-coefficient dots for a node tile.

    Writes:
      xp_ref   [H, T, C]  head-major projected features (bf16)
      asrc_ref [H, T]     <xp_h, att_src_h>  (src nodes will sit on lanes)
      adst_ref [T, H]     <xp_h, att_dst_h>  (dst nodes stay on sublanes)
    """
    xp = jnp.dot(h.astype(jnp.bfloat16), wg_ref[...],
                 preferred_element_type=jnp.float32)                    # [T, H*C]
    # Per-head <xp, att> via one tiny block-diagonal matmul [T,HC]x[HC,2H];
    # these are O(T*H) values, so layout moves on them are noise.
    av = jnp.dot(xp.astype(jnp.bfloat16), attcat_ref[...],
                 preferred_element_type=jnp.float32)                    # [T, 2H]
    t, hc = xp.shape
    c = hc // heads
    # Head-major xp: leading-axis slices in the attention kernel are free.
    xp_ref[...] = jnp.stack([xp[:, hh * c:(hh + 1) * c] for hh in range(heads)],
                            axis=0).astype(jnp.bfloat16)                # [H, T, C]
    asrc_ref[...] = jnp.transpose(av[:, :heads], (1, 0))                # [H, T]
    adst_ref[...] = av[:, heads:]                                       # [T, H]


def _gat_attention(adj_ref, xp_ref, asrc_ref, adst_ref, gbias_ref, heads):
    """Masked softmax attention + aggregation for one dst-node tile.

    adj_ref  [T, N] int8 edge multiplicities (0 = no edge)
    xp_ref   [H, N, C] bf16 (all source nodes, resident in VMEM)
    asrc_ref [H, N] f32, adst_ref [T, H] f32, gbias_ref [1, H*C] f32
    returns  [T, H*C] f32
    """
    cnt = adj_ref[...].astype(jnp.float32)                              # [T, N]
    mask_bias = jnp.where(cnt > 0.0, 0.0, -1e30)                        # [T, N]
    xp = xp_ref[...]                                                    # [H, N, C]
    asrc = asrc_ref[...]                                                # [H, N]
    adst = adst_ref[...]                                                # [T, H]
    outs = []
    for hh in range(heads):   # static unroll; leading-axis / thin slices only
        # e[t, n] = leaky_relu(a_dst[t] + a_src[n], 0.2) for edge n -> t
        e = _leaky_relu(adst[:, hh:hh + 1] + asrc[hh:hh + 1, :], 0.2) + mask_bias
        m = jnp.max(e, axis=-1, keepdims=True)                          # [T, 1]
        # Unnormalized probs; cnt weights duplicate edges, masked entries -> 0.
        p = cnt * jnp.exp(e - m)                                        # [T, N]
        s = jnp.sum(p, axis=-1, keepdims=True)                          # [T, 1] >= 1
        agg = jnp.dot(p.astype(jnp.bfloat16), xp[hh],
                      preferred_element_type=jnp.float32)               # [T, C]
        # Deferred softmax normalization (exact reciprocal, O(T*C) work).
        outs.append(agg * pl.reciprocal(s))
    return jnp.concatenate(outs, axis=-1) + gbias_ref[...]              # [T, H*C]


# --------------------------------- kernels -----------------------------------

def _prep1_kernel(x_ref, w1_ref, b1_ref, wg1_ref, attcat1_ref,
                  xp_ref, asrc_ref, adst_ref, *, heads):
    # linear1 + LeakyReLU(0.01), then GAT1 projection, per node-row tile.
    h0 = _leaky_relu(
        jnp.dot(x_ref[...].astype(jnp.bfloat16), w1_ref[...],
                preferred_element_type=jnp.float32) + b1_ref[...], 0.01)
    _project_heads(h0, wg1_ref, attcat1_ref, xp_ref, asrc_ref, adst_ref, heads)


def _attn1_proj2_kernel(adj_ref, xp_ref, asrc_ref, adst_ref, gb1_ref,
                        wg2_ref, attcat2_ref,
                        xp2_ref, asrc2_ref, adst2_ref, *, heads):
    # GAT layer 1 attention for this dst tile, then (dropout = identity at
    # inference) GAT layer 2's projection fused in so h1 never hits HBM.
    h1 = _gat_attention(adj_ref, xp_ref, asrc_ref, adst_ref, gb1_ref, heads)
    _project_heads(h1, wg2_ref, attcat2_ref, xp2_ref, asrc2_ref, adst2_ref, heads)


def _attn2_out_kernel(adj_ref, xp_ref, asrc_ref, adst_ref, gb2_ref,
                      w2_ref, b2_ref, o_ref, *, heads):
    # GAT layer 2 attention for this dst tile, then linear2 + LeakyReLU(0.01).
    h2 = _gat_attention(adj_ref, xp_ref, asrc_ref, adst_ref, gb2_ref, heads)
    o_ref[...] = _leaky_relu(
        jnp.dot(h2.astype(jnp.bfloat16), w2_ref[...],
                preferred_element_type=jnp.float32) + b2_ref[...], 0.01)


# --------------------------------- wrapper ------------------------------------

def _const_spec(shape):
    zeros = (0,) * len(shape)
    return pl.BlockSpec(shape, lambda i, _z=zeros: _z)


def gat_forward(params, x, adj, *, heads, tile_nodes=128):
    n, in_ch = x.shape
    hid = params["lin1_w"].shape[1]
    out_ch = params["lin2_w"].shape[1]
    c = hid // heads
    assert hid % heads == 0 and n % tile_nodes == 0

    grid = (n // tile_nodes,)
    cparams = pltpu.CompilerParams(dimension_semantics=("parallel",))

    # Per-node intermediate shapes (bf16 xp keeps DMA bytes + MXU operands small).
    node_out_shape = (
        jax.ShapeDtypeStruct((heads, n, c), jnp.bfloat16),   # xp head-major
        jax.ShapeDtypeStruct((heads, n), jnp.float32),       # a_src
        jax.ShapeDtypeStruct((n, heads), jnp.float32),       # a_dst
    )
    node_out_specs = (
        pl.BlockSpec((heads, tile_nodes, c), lambda i: (0, i, 0)),
        pl.BlockSpec((heads, tile_nodes), lambda i: (0, i)),
        pl.BlockSpec((tile_nodes, heads), lambda i: (i, 0)),
    )
    adj_spec = pl.BlockSpec((tile_nodes, n), lambda i: (i, 0))
    adst_spec = pl.BlockSpec((tile_nodes, heads), lambda i: (i, 0))

    g1, g2 = params["gat1"], params["gat2"]

    # Call 1: linear1 + lrelu + GAT1 projection / attention coefficients.
    xp1, asrc1, adst1 = pl.pallas_call(
        functools.partial(_prep1_kernel, heads=heads),
        grid=grid,
        in_specs=[
            pl.BlockSpec((tile_nodes, in_ch), lambda i: (i, 0)),
            _const_spec(params["lin1_w"].shape),
            _const_spec(params["lin1_b"].shape),
            _const_spec(g1["w"].shape),
            _const_spec(g1["att_cat"].shape),
        ],
        out_specs=node_out_specs,
        out_shape=node_out_shape,
        compiler_params=cparams,
    )(x, params["lin1_w"], params["lin1_b"], g1["w"], g1["att_cat"])

    # Call 2: GAT1 attention + aggregation (dst-tiled) fused with GAT2 projection.
    xp2, asrc2, adst2 = pl.pallas_call(
        functools.partial(_attn1_proj2_kernel, heads=heads),
        grid=grid,
        in_specs=[
            adj_spec,
            _const_spec((heads, n, c)),     # xp1 resident
            _const_spec((heads, n)),        # a_src1 resident
            adst_spec,                      # a_dst1 tile
            _const_spec(g1["b"].shape),
            _const_spec(g2["w"].shape),
            _const_spec(g2["att_cat"].shape),
        ],
        out_specs=node_out_specs,
        out_shape=node_out_shape,
        compiler_params=cparams,
    )(adj, xp1, asrc1, adst1, g1["b"], g2["w"], g2["att_cat"])

    # Call 3: GAT2 attention + aggregation (dst-tiled) fused with linear2 + lrelu.
    out = pl.pallas_call(
        functools.partial(_attn2_out_kernel, heads=heads),
        grid=grid,
        in_specs=[
            adj_spec,
            _const_spec((heads, n, c)),     # xp2 resident
            _const_spec((heads, n)),        # a_src2 resident
            adst_spec,                      # a_dst2 tile
            _const_spec(g2["b"].shape),
            _const_spec(params["lin2_w"].shape),
            _const_spec(params["lin2_b"].shape),
        ],
        out_specs=pl.BlockSpec((tile_nodes, out_ch), lambda i: (i, 0)),
        out_shape=jax.ShapeDtypeStruct((n, out_ch), jnp.float32),
        compiler_params=cparams,
    )(adj, xp2, asrc2, adst2, g2["b"], params["lin2_w"], params["lin2_b"])
    return out


# ----------------------------- parameter init --------------------------------

def _uniform(key, shape, fan_in, dtype=jnp.float32):
    bound = 1.0 / math.sqrt(fan_in)
    return jax.random.uniform(key, shape, jnp.float32, -bound, bound).astype(dtype)


def _att_cat(att_src, att_dst):
    """[H, C] per-head att vectors -> block-diagonal [H*C, 2H] column matrix."""
    h, c = att_src.shape
    eye = jnp.eye(h, dtype=jnp.float32)
    src_cols = (eye[:, :, None] * att_src[:, None, :]).reshape(h, h * c).T   # [HC, H]
    dst_cols = (eye[:, :, None] * att_dst[:, None, :]).reshape(h, h * c).T   # [HC, H]
    return jnp.concatenate([src_cols, dst_cols], axis=1)                     # [HC, 2H]


def init_gatconv_params(key, in_ch, heads, c):
    k1, k2, k3 = jax.random.split(key, 3)
    return {
        "w": _uniform(k1, (in_ch, heads * c), in_ch, jnp.bfloat16),   # lin (bias=False)
        "att_cat": _att_cat(_uniform(k2, (heads, c), c),
                            _uniform(k3, (heads, c), c)).astype(jnp.bfloat16),
        "b": jnp.zeros((1, heads * c), jnp.float32),                  # GATConv bias
    }


def init_params(key, in_ch, hid, out_ch, heads):
    c = hid // heads
    ks = jax.random.split(key, 6)
    return {
        "lin1_w": _uniform(ks[0], (in_ch, hid), in_ch, jnp.bfloat16),
        "lin1_b": _uniform(ks[1], (1, hid), in_ch),
        "lin2_w": _uniform(ks[2], (hid, out_ch), hid, jnp.bfloat16),
        "lin2_b": _uniform(ks[3], (1, out_ch), hid),
        "gat1": init_gatconv_params(ks[4], hid, heads, c),
        "gat2": init_gatconv_params(ks[5], hid, heads, c),
    }


# ----------------------------------- main -------------------------------------

if __name__ == "__main__":
    N, IN_CH, HID, OUT_CH = 256, 32, 128, 128
    HEADS, E, TILE = 4, 1024, 128

    key = jax.random.PRNGKey(0)
    k_x, k_src, k_dst, k_typ, k_par = jax.random.split(key, 5)

    x = jax.random.normal(k_x, (N, IN_CH), jnp.float32)
    # edge_index = [src; dst]; edge_type is unused by the reference forward.
    src = jax.random.randint(k_src, (E,), 0, N)
    dst = jax.random.randint(k_dst, (E,), 0, N)
    edge_type = jax.random.randint(k_typ, (E,), 0, 3)   # noqa: F841 (unused, as in spec)

    # int8 edge-multiplicity matrix: counts duplicate edges (matches PyG's
    # edge-list softmax) and keeps exactly one self loop per node
    # (GATConv add_self_loops=True removes existing self loops, then adds one).
    eye = jnp.eye(N, dtype=jnp.int32)
    adj = jnp.zeros((N, N), jnp.int32).at[dst, src].add(1)
    adj = (adj * (1 - eye) + eye).astype(jnp.int8)

    params = init_params(k_par, IN_CH, HID, OUT_CH, HEADS)

    out = gat_forward(params, x, adj, heads=HEADS, tile_nodes=TILE)
    out = jax.block_until_ready(out)
    assert out.shape == (N, OUT_CH)
    assert bool(jnp.all(jnp.isfinite(out)))
    print("KERNEL_OK")
</pallas_src>

<mosaic_0001>
module attributes {stable_mosaic.version = 11 : i64} {
  func.func @_prep1_kernel(%arg0: i32, %arg1: memref<128x32xf32, #tpu.memory_space<vmem>>, %arg2: memref<32x128xbf16, #tpu.memory_space<vmem>>, %arg3: memref<1x128xf32, #tpu.memory_space<vmem>>, %arg4: memref<128x128xbf16, #tpu.memory_space<vmem>>, %arg5: memref<128x8xbf16, #tpu.memory_space<vmem>>, %arg6: memref<4x128x32xbf16, #tpu.memory_space<vmem>>, %arg7: memref<4x128xf32, #tpu.memory_space<vmem>>, %arg8: memref<128x4xf32, #tpu.memory_space<vmem>>) attributes {dimension_semantics = [#tpu.dimension_semantics<parallel>], iteration_bounds = array<i64: 2>, scalar_prefetch = 0 : i64, scratch_operands = 0 : i64, tpu.core_type = #tpu.core_type<tc>, window_params = [{transform_indices = @transform_0, window_bounds = array<i64: 128, 32>}, {pipeline_mode = #tpu.pipeline_mode<synchronous>, transform_indices = @transform_1, window_bounds = array<i64: 32, 128>}, {pipeline_mode = #tpu.pipeline_mode<synchronous>, transform_indices = @transform_2, window_bounds = array<i64: 1, 128>}, {pipeline_mode = #tpu.pipeline_mode<synchronous>, transform_indices = @transform_3, window_bounds = array<i64: 128, 128>}, {pipeline_mode = #tpu.pipeline_mode<synchronous>, transform_indices = @transform_4, window_bounds = array<i64: 128, 8>}, {transform_indices = @transform_5, window_bounds = array<i64: 4, 128, 32>}, {transform_indices = @transform_6, window_bounds = array<i64: 4, 128>}, {transform_indices = @transform_7, window_bounds = array<i64: 128, 4>}]} {
    %c0 = arith.constant 0 : index
    %c0_0 = arith.constant 0 : index
    %0 = vector.load %arg1[%c0, %c0_0] : memref<128x32xf32, #tpu.memory_space<vmem>>, vector<128x32xf32>
    %1 = arith.truncf %0 : vector<128x32xf32> to vector<128x32xbf16>
    %c0_1 = arith.constant 0 : index
    %c0_2 = arith.constant 0 : index
    %2 = vector.load %arg2[%c0_1, %c0_2] : memref<32x128xbf16, #tpu.memory_space<vmem>>, vector<32x128xbf16>
    %cst = arith.constant dense<0.000000e+00> : vector<128x128xf32>
    %3 = tpu.matmul %1, %2, %cst {dimension_numbers = #tpu.dot_dimension_numbers<[1], [0], [0], [1], [0, 0, 1, 1], [], []>} : vector<128x32xbf16>, vector<32x128xbf16>, vector<128x128xf32> -> vector<128x128xf32>
    %c0_3 = arith.constant 0 : index
    %c0_4 = arith.constant 0 : index
    %4 = vector.load %arg3[%c0_3, %c0_4] : memref<1x128xf32, #tpu.memory_space<vmem>>, vector<1x128xf32>
    %5 = vector.broadcast %4 : vector<1x128xf32> to vector<128x128xf32>
    %6 = arith.addf %3, %5 : vector<128x128xf32>
    %cst_5 = arith.constant 0.000000e+00 : f32
    %7 = vector.broadcast %cst_5 : f32 to vector<128x128xf32>
    %8 = arith.cmpf oge, %6, %7 : vector<128x128xf32>
    %cst_6 = arith.constant 0.00999999977 : f32
    %9 = vector.broadcast %cst_6 : f32 to vector<128x128xf32>
    %10 = arith.mulf %9, %6 : vector<128x128xf32>
    %11 = arith.select %8, %6, %10 : vector<128x128xi1>, vector<128x128xf32>
    %12 = arith.truncf %11 : vector<128x128xf32> to vector<128x128xbf16>
    %c0_7 = arith.constant 0 : index
    %c0_8 = arith.constant 0 : index
    %13 = vector.load %arg4[%c0_7, %c0_8] : memref<128x128xbf16, #tpu.memory_space<vmem>>, vector<128x128xbf16>
    %cst_9 = arith.constant dense<0.000000e+00> : vector<128x128xf32>
    %14 = tpu.matmul %12, %13, %cst_9 {dimension_numbers = #tpu.dot_dimension_numbers<[1], [0], [0], [1], [0, 0, 1, 1], [], []>} : vector<128x128xbf16>, vector<128x128xbf16>, vector<128x128xf32> -> vector<128x128xf32>
    %15 = arith.truncf %14 : vector<128x128xf32> to vector<128x128xbf16>
    %c0_10 = arith.constant 0 : index
    %c0_11 = arith.constant 0 : index
    %16 = vector.load %arg5[%c0_10, %c0_11] : memref<128x8xbf16, #tpu.memory_space<vmem>>, vector<128x8xbf16>
    %cst_12 = arith.constant dense<0.000000e+00> : vector<128x8xf32>
    %17 = tpu.matmul %15, %16, %cst_12 {dimension_numbers = #tpu.dot_dimension_numbers<[1], [0], [0], [1], [0, 0, 1, 1], [], []>} : vector<128x128xbf16>, vector<128x8xbf16>, vector<128x8xf32> -> vector<128x8xf32>
    %18 = vector.extract_strided_slice %14 {offsets = [0, 0], sizes = [128, 32], strides = [1, 1]} : vector<128x128xf32> to vector<128x32xf32>
    %19 = vector.extract_strided_slice %14 {offsets = [0, 32], sizes = [128, 32], strides = [1, 1]} : vector<128x128xf32> to vector<128x32xf32>
    %20 = vector.extract_strided_slice %14 {offsets = [0, 64], sizes = [128, 32], strides = [1, 1]} : vector<128x128xf32> to vector<128x32xf32>
    %21 = vector.extract_strided_slice %14 {offsets = [0, 96], sizes = [128, 32], strides = [1, 1]} : vector<128x128xf32> to vector<128x32xf32>
    %22 = vector.shape_cast %18 : vector<128x32xf32> to vector<1x128x32xf32>
    %23 = vector.shape_cast %19 : vector<128x32xf32> to vector<1x128x32xf32>
    %24 = vector.shape_cast %20 : vector<128x32xf32> to vector<1x128x32xf32>
    %25 = vector.shape_cast %21 : vector<128x32xf32> to vector<1x128x32xf32>
    %26 = tpu.concatenate %22, %23, %24, %25 in 0 : vector<1x128x32xf32>, vector<1x128x32xf32>, vector<1x128x32xf32>, vector<1x128x32xf32> -> vector<4x128x32xf32>
    %27 = arith.truncf %26 : vector<4x128x32xf32> to vector<4x128x32xbf16>
    %c0_13 = arith.constant 0 : index
    %c0_14 = arith.constant 0 : index
    %c0_15 = arith.constant 0 : index
    %28 = vector.load %arg6[%c0_13, %c0_14, %c0_15] : memref<4x128x32xbf16, #tpu.memory_space<vmem>>, vector<4x128x32xbf16>
    tpu.vector_store %arg6[%c0_13, %c0_14, %c0_15], %27 {strides = array<i32>} : memref<4x128x32xbf16, #tpu.memory_space<vmem>>, vector<4x128x32xbf16>,
    %29 = vector.extract_strided_slice %17 {offsets = [0, 0], sizes = [128, 4], strides = [1, 1]} : vector<128x8xf32> to vector<128x4xf32>
    %30 = tpu.transpose %29, [1, 0] : vector<128x4xf32> -> vector<4x128xf32>
    %c0_16 = arith.constant 0 : index
    %c0_17 = arith.constant 0 : index
    %31 = vector.load %arg7[%c0_16, %c0_17] : memref<4x128xf32, #tpu.memory_space<vmem>>, vector<4x128xf32>
    tpu.vector_store %arg7[%c0_16, %c0_17], %30 {strides = array<i32>} : memref<4x128xf32, #tpu.memory_space<vmem>>, vector<4x128xf32>,
    %32 = vector.extract_strided_slice %17 {offsets = [0, 4], sizes = [128, 4], strides = [1, 1]} : vector<128x8xf32> to vector<128x4xf32>
    %c0_18 = arith.constant 0 : index
    %c0_19 = arith.constant 0 : index
    %33 = vector.load %arg8[%c0_18, %c0_19] : memref<128x4xf32, #tpu.memory_space<vmem>>, vector<128x4xf32>
    tpu.vector_store %arg8[%c0_18, %c0_19], %32 {strides = array<i32>} : memref<128x4xf32, #tpu.memory_space<vmem>>, vector<128x4xf32>,
    return
  }
  func.func @transform_0(%arg0: i32) -> (i32, i32) {
    %c0_i32 = arith.constant 0 : i32
    %c0_i32_0 = arith.constant 0 : i32
    return %arg0, %c0_i32 : i32, i32
  }
  func.func @transform_1(%arg0: i32) -> (i32, i32) {
    %c0_i32 = arith.constant 0 : i32
    %c0_i32_0 = arith.constant 0 : i32
    %c0_i32_1 = arith.constant 0 : i32
    return %c0_i32, %c0_i32_0 : i32, i32
  }
  func.func @transform_2(%arg0: i32) -> (i32, i32) {
    %c0_i32 = arith.constant 0 : i32
    %c0_i32_0 = arith.constant 0 : i32
    %c0_i32_1 = arith.constant 0 : i32
    return %c0_i32, %c0_i32_0 : i32, i32
  }
  func.func @transform_3(%arg0: i32) -> (i32, i32) {
    %c0_i32 = arith.constant 0 : i32
    %c0_i32_0 = arith.constant 0 : i32
    %c0_i32_1 = arith.constant 0 : i32
    return %c0_i32, %c0_i32_0 : i32, i32
  }
  func.func @transform_4(%arg0: i32) -> (i32, i32) {
    %c0_i32 = arith.constant 0 : i32
    %c0_i32_0 = arith.constant 0 : i32
    %c0_i32_1 = arith.constant 0 : i32
    return %c0_i32, %c0_i32_0 : i32, i32
  }
  func.func @transform_5(%arg0: i32) -> (i32, i32, i32) {
    %c0_i32 = arith.constant 0 : i32
    %c0_i32_0 = arith.constant 0 : i32
    %c0_i32_1 = arith.constant 0 : i32
    return %c0_i32, %arg0, %c0_i32_0 : i32, i32, i32
  }
  func.func @transform_6(%arg0: i32) -> (i32, i32) {
    %c0_i32 = arith.constant 0 : i32
    %c0_i32_0 = arith.constant 0 : i32
    return %c0_i32, %arg0 : i32, i32
  }
  func.func @transform_7(%arg0: i32) -> (i32, i32) {
    %c0_i32 = arith.constant 0 : i32
    %c0_i32_0 = arith.constant 0 : i32
    return %arg0, %c0_i32 : i32, i32
  }
}

</mosaic_0001>

<bundles_post_ra>
// kernel: tpu_custom_call.1
= control target key start
LH: loop header
LB: loop body
LE: loop exit
PB: predicated region body
PF: predicated region fallthrough
CT: control target
= control target key end

     0   :  { %13 = vsyncpa [#allocation4], 0  ;;  %s2952_s0 = inlined_call_operand.vmem [shape: f32[256,32], index: 0, kind: input, shape index: {}]   ;;  %s2953_s1 = inlined_call_operand.vmem [shape: bf16[32,128], index: 1, kind: input, shape index: {}]   ;;  %s2954_s2 = inlined_call_operand.vmem [shape: f32[1,128], index: 2, kind: input, shape index: {}]   ;;  %s2955_s3 = inlined_call_operand.vmem [shape: bf16[128,128], index: 3, kind: input, shape index: {}]   ;;  %s2956_s4 = inlined_call_operand.vmem [shape: bf16[128,8], index: 4, kind: input, shape index: {}]   ;;  %s2957_s5 = inlined_call_operand.vmem [shape: bf16[4,256,32], index: 5, kind: output, shape index: {0}]   ;;  %s2958_s6 = inlined_call_operand.hbm [shape: f32[4,256], index: 6, kind: output, shape index: {1}]   ;;  %s2959_s7 = inlined_call_operand.vmem [shape: f32[256,4], index: 7, kind: output, shape index: {2}]  }
   0x1   :  { %15 = vsyncpa [#allocation4 + $0x1], 0  ;;  %s2468_s24 = smov 0   ;;  %s2470_s25 = smov 0  }
   0x2   :  { %s2472_s26 = smov 0   ;;  %s2474_s27 = smov 0  }
   0x3 LB: > { %s2489_s28 = sadd.s32 4294967295, %s2421_s27   ;;  %s1879_s29 = sadd.s32 4294967294, %s2421_s27   ;;  %s2421_s27 = sphi %s2474_s27, %s2965_s27   ;;  %s2417_s26 = sphi %s2472_s26, %s2964_s26   ;;  %s2413_s25 = sphi %s2470_s25, %s2963_s25   ;;  %s2409_s24 = sphi %s2468_s24, %s2962_s24  }
   0x4   : > { %s2493_s30 = sadd.s32 1, %s2421_s27   ;;  %s138_s8 = sadd.s32 1, %s2417_s26 }
   0x5   : > { %s135_s9 = ssub.s32 %s2421_s27, %s2493_s30  ;;  %p148_p0 = scmp.ne.s32.totalorder %s2417_s26, %s2413_s25 }
   0x6   : > { %p136_p1 = scmp.eq.s32.totalorder %s135_s9, 0  ;;  %p149_p2 = scmp.eq.s32.totalorder %s2489_s28, 1 }
   0x7   : > { %p180_p3 = scmp.ne.s32.totalorder %s2413_s25, %s2409_s24  ;;  %p181_p4 = scmp.eq.s32.totalorder %s1879_s29, 1 }
   0x8   : > { %s2504_s10 = scalar_select %p136_p1, %s2417_s26, %s138_s8  }
   0x9   : > { %p2506_p5 = por %p149_p2, %p148_p0  ;;  %p2510_p6 = por %p181_p4, %p180_p3 }
   0xa   : > { %p1882_p7 = scmp.ge.s32.totalorder %s2421_s27, 1  ;;  %p246_p8 = scmp.lt.s32.totalorder %s2421_s27, 3 }
   0xc   : > { %p247_p9 = pnand %p1882_p7, %p246_p8 }
   0xd   : > { %v2341_v0 = vld [vmem:[%s2953_s1] sm:$0xff] (!%p247_p9)   ;;  %s1885_s15 = sshll.u32 (!%p247_p9), %s2489_s28, 4  ;;  %v2342_v1 = vld [vmem:[%s2953_s1 + $0x8] sm:$0xff] (!%p247_p9)   ;;  %v2345_v4 = vld [vmem:[%s2955_s3 + $0x10] sm:$0xff] (!%p247_p9)   ;;  %vm348_vm0 = vcmask (!%p247_p9), 261120   ;;  %s2627_s19 = sand.u32 (!%p247_p9), 1, %s2413_s25  }
   0xe   : > { %250 = sbr.rel (%p247_p9) target bundleno = 881 (0x371), region = 40  ;;  %p288_p10 = scmp.lt.s32.totalorder (!%p247_p9), %s1885_s15, 31  ;;  %2094 = vmatprep.subr.bf16.mxu0 (!%p247_p9), %v2341_v0  ;;  %v2343_v2 = vld [vmem:[%s2955_s3] sm:$0xff] (!%p247_p9)   ;;  %v2344_v3 = vld [vmem:[%s2955_s3 + $0x8] sm:$0xff] (!%p247_p9)   ;;  %v2346_v14 = vld [vmem:[%s2955_s3 + $0x18] sm:$0xff] (!%p247_p9)  }
   0xf   : > { %2095 = vmatpush3.bf16.msra.mxu0 (!%p247_p9), %v2341_v0  ;;  %2114 = vmatprep.subr.bf16.mxu1 (!%p247_p9), %v2343_v2  ;;  %v2347_v19 = vld [vmem:[%s2955_s3 + $0x20] sm:$0xff] (!%p247_p9)   ;;  %v2348_v31 = vld [vmem:[%s2955_s3 + $0x28] sm:$0xff] (!%p247_p9)   ;;  %v2349_v32 = vld [vmem:[%s2955_s3 + $0x30] sm:$0xff] (!%p247_p9)   ;;  %s1883_s20 = sshll.u32 (!%p247_p9), %s2627_s19, 8  ;;  %s2423_s23 = smov (!%p247_p9), 64  }
  0x10   : > { %2096 = vmatprep.subr.bf16.mxu0 (!%p247_p9), %v2342_v1  ;;  %2115 = vmatpush3.bf16.msra.mxu1 (!%p247_p9), %v2343_v2  ;;  %v2350_v33 = vld [vmem:[%s2955_s3 + $0x38] sm:$0xff] (!%p247_p9)   ;;  %v2351_v34 = vld [vmem:[%s2956_s4] sm:$0xff] (!%p247_p9)   ;;  %v2352_v35 = vld [vmem:[%s2956_s4 + $0x8] sm:$0xff] (!%p247_p9)   ;;  %s2630_s21 = scalar_lea.vmem (!%p247_p9), [#allocation2], %s1883_s20  ;;  %s2424_s29 = smov (!%p247_p9), 96  }
  0x11   : > { %2116 = vmatprep.subr.bf16.mxu1 (!%p247_p9), %v2344_v3  ;;  %v2353_v36 = vld [vmem:[%s2956_s4 + $0x10] sm:$0xff] (!%p247_p9)   ;;  %v2354_v37 = vld [vmem:[%s2956_s4 + $0x18] sm:$0xff] (!%p247_p9)   ;;  %v2355_v38 = vld [vmem:[%s2956_s4 + $0x20] sm:$0xff] (!%p247_p9)   ;;  %s2425_s9 = smov (!%p247_p9), 32   ;;  %s1448_s17 = scalar_lea.sflag (!%p247_p9), [#allocation4], %s2627_s19 }
  0x12   : > { %v2356_v39 = vld [vmem:[%s2956_s4 + $0x28] sm:$0xff] (!%p247_p9)   ;;  %v2357_v40 = vld [vmem:[%s2956_s4 + $0x30] sm:$0xff] (!%p247_p9)   ;;  %v2605_v41 = vld [vmem:[%s2954_s2] ss:$0 sm:$0xff] (!%p247_p9) }
  0x13   : > { %2097 = vmatpush3.bf16.msra.mxu0 (!%p247_p9), %v2342_v1 }
  0x14   : > { %2117 = vmatpush3.bf16.msra.mxu1 (!%p247_p9), %v2344_v3  ;;  %2146 = vmatprep.subr.bf16.mxu0 (!%p247_p9), %v2351_v34 }
  0x15   : > { %s2967_s15 = smov (!%p288_p10, %s1885_s15), 31  ;;  %2118 = vmatprep.subr.bf16.mxu1 %v2345_v4  ;;  %s2051_s18 = sshll.u32 (%p2506_p5), %s2489_s28, 6 }
  0x16   : > { %s1886_s22 = sshll.u32 %s2967_s15, 3  ;;  %s1884_s15 = sshll.u32 %s2627_s19, 2 }
  0x17   : > { %s2537_s8 = scalar_lea.vmem %s2952_s0, %s1886_s22  ;;  %s2805_s16 = scalar_lea.vmem %s2959_s7, %s1886_s22 }
  0x18   : > { %v301_v5 = vld [vmem:[%s2537_s8] sm:$0xff]  ;;  %v302_v6 = vld [vmem:[%s2537_s8 + $0x8] sm:$0xff]  ;;  %v303_v7 = vld [vmem:[%s2537_s8 + $0x10] sm:$0xff]  ;;  %2119 = vmatpush3.bf16.msra.mxu1 %v2345_v4  ;;  %s2816_s22 = scalar_lea.vmem [#allocation3], %s1884_s15 }
  0x19   : > { %v317_v8 = vpack.c.bf16 %v302_v6, %v301_v5  ;;  %v304_v9 = vld [vmem:[%s2537_s8 + $0x18] sm:$0xff]  ;;  %v305_v10 = vld [vmem:[%s2537_s8 + $0x20] sm:$0xff]  ;;  %v306_v11 = vld [vmem:[%s2537_s8 + $0x28] sm:$0xff]  ;;  %2120 = vmatprep.subr.bf16.mxu1 %v2346_v14 }
  0x1a   : > { %v318_v12 = vpack.c.bf16 %v304_v9, %v303_v7  ;;  %v319_v13 = vpack.c.bf16 %v306_v11, %v305_v10  ;;  %v307_v15 = vld [vmem:[%s2537_s8 + $0x30] sm:$0xff]  ;;  %v308_v16 = vld [vmem:[%s2537_s8 + $0x38] sm:$0xff]  ;;  %v309_v17 = vld [vmem:[%s2537_s8 + $0x40] sm:$0xff] }
  0x1b   : > { %2098 = vmatprep.mubr.msk.bf16.mxu0 %vm348_vm0, %v317_v8  ;;  %v310_v18 = vld [vmem:[%s2537_s8 + $0x48] sm:$0xff]  ;;  %v320_v20 = vpack.c.bf16 %v308_v16, %v307_v15  ;;  %v311_v22 = vld [vmem:[%s2537_s8 + $0x50] sm:$0xff]  ;;  %v312_v23 = vld [vmem:[%s2537_s8 + $0x58] sm:$0xff] }
  0x1c   : > { %2099 = vmatmul.mubr.msk.bf16.vlgmr.msra.gmra.mrb[0].mxu0 %vm348_vm0, %v318_v12  ;;  %v321_v21 = vpack.c.bf16 %v310_v18, %v309_v17  ;;  %2121 = vmatpush3.bf16.msra.mxu1 %v2346_v14  ;;  %v313_v24 = vld [vmem:[%s2537_s8 + $0x60] sm:$0xff]  ;;  %v314_v25 = vld [vmem:[%s2537_s8 + $0x68] sm:$0xff]  ;;  %v322_v26 = vpack.c.bf16 %v312_v23, %v311_v22  ;;  %v315_v28 = vld [vmem:[%s2537_s8 + $0x70] sm:$0xff] }
  0x1d   : > { %2102 = vmatprep.mubr.msk.bf16.mxu0 %vm348_vm0, %v319_v13  ;;  %2122 = vmatprep.subr.bf16.mxu1 %v2347_v19  ;;  %v323_v27 = vpack.c.bf16 %v314_v25, %v313_v24  ;;  %v316_v29 = vld [vmem:[%s2537_s8 + $0x78] sm:$0xff]  ;;  %s2426_s8 = smov 124  }
  0x1e   : > { %v324_v30 = vpack.c.bf16 %v316_v29, %v315_v28  ;;  %2147 = vmatpush3.bf16.msra.mxu0 %v2351_v34 }
  0x1f   : > { %2148 = vmatprep.subr.bf16.mxu0 %v2352_v35 }
  0x20   : > { %2123 = vmatpush3.bf16.msra.mxu1 %v2347_v19 }
  0x21   : > { %2124 = vmatprep.subr.bf16.mxu1 %v2348_v31 }
  0x22   : > { %2149 = vmatpush3.bf16.msra.mxu0 %v2352_v35 }
  0x23   : > { %2150 = vmatprep.subr.bf16.mxu0 %v2353_v36 }
  0x24   : > { %2103 = vmatmul.mubr.msk.bf16.gmra.mrb[4].mxu0 %vm348_vm0, %v320_v20  ;;  %2125 = vmatpush3.bf16.msra.mxu1 %v2348_v31 }
  0x25   : > { %2106 = vmatprep.mubr.msk.bf16.mxu0 %vm348_vm0, %v321_v21  ;;  %2126 = vmatprep.subr.bf16.mxu1 %v2349_v32 }
  0x26   : > { %2151 = vmatpush3.bf16.msra.mxu0 %v2353_v36 }
  0x27   : > { %2152 = vmatprep.subr.bf16.mxu0 %v2354_v37 }
  0x28   : > { %2127 = vmatpush3.bf16.msra.mxu1 %v2349_v32 }
  0x29   : > { %2128 = vmatprep.subr.bf16.mxu1 %v2350_v33 }
  0x2a   : > { %2153 = vmatpush3.bf16.msra.mxu0 %v2354_v37 }
  0x2b   : > { %2154 = vmatprep.subr.bf16.mxu0 %v2355_v38 }
  0x2c   : > { %2107 = vmatmul.mubr.msk.bf16.gmra.mrb[8].mxu0 %vm348_vm0, %v322_v26  ;;  %2129 = vmatpush3.bf16.msra.mxu1 %v2350_v33 }
  0x2d   : > { %2110 = vmatprep.mubr.msk.bf16.mxu0 %vm348_vm0, %v323_v27 }
  0x2e   : > { %2155 = vmatpush3.bf16.msra.mxu0 %v2355_v38 }
  0x2f   : > { %2156 = vmatprep.subr.bf16.mxu0 %v2356_v39 }
  0x32   : > { %2157 = vmatpush3.bf16.msra.mxu0 %v2356_v39 }
  0x33   : > { %2158 = vmatprep.subr.bf16.mxu0 %v2357_v40 }
  0x34   : > { %2111 = vmatmul.mubr.msk.bf16.gmra.mrb[12].mxu0 %vm348_vm0, %v324_v30 }
  0x36   : > { %2159 = vmatpush3.bf16.msra.mxu0 %v2357_v40 }
  0xef   : > { %v2100_v42 = vpop.f32.mrb[0].mxu0 }
  0xf0   : > { %v416_v43 = vadd.f32 %v2100_v42, %v2605_v41  ;;  %v407_v44 = vpop.f32.mrb[1].mxu0 }
  0xf1   : > { %v408_v45 = vadd.f32 %v2605_v41, %v407_v44  ;;  %v2101_v46 = vpop.f32.mrb[2].mxu0 }
  0xf2   : > { %v488_v47 = vmul.f32 0.01, %v416_v43  ;;  %v419_v48 = vadd.f32 %v2101_v46, %v2605_v41  ;;  %v410_v49 = vpop.f32.mrb[3].mxu0  ;;  %vm472_vm1 = vcmp.ge.f32.partialorder %v416_v43, 0.0 }
  0xf3   : > { %v486_v50 = vmul.f32 0.01, %v408_v45  ;;  %v411_v51 = vadd.f32 %v2605_v41, %v410_v49  ;;  %vm470_vm3 = vcmp.ge.f32.partialorder %v408_v45, 0.0 }
  0xf4   : > { %vm473_vm2 = vcmp.ge.f32.partialorder %v419_v48, 0.0  ;;  %v489_v52 = vmul.f32 0.01, %v419_v48  ;;  %v504_v54 = vsel %vm472_vm1, %v416_v43, %v488_v47  ;;  %vm1264_vm1 = vcmask 257024  }
  0xf5   : > { %v487_v53 = vmul.f32 0.01, %v411_v51  ;;  %vm471_vm4 = vcmp.ge.f32.partialorder %v411_v51, 0.0  ;;  %v502_v57 = vsel %vm470_vm3, %v408_v45, %v486_v50 }
  0xf6   : > { %v505_v55 = vsel %vm473_vm2, %v419_v48, %v489_v52  ;;  %vm1426_vm2 = vcmask 31744  }
  0xf7   : > { %v2104_v56 = vpop.f32.mrb[4].mxu0  ;;  %v503_v58 = vsel %vm471_vm4, %v411_v51, %v487_v53  ;;  %v519_v59 = vpack.c.bf16 %v505_v55, %v504_v54  ;;  %v2358_v51 = vld [vmem:[%s2956_s4 + $0x38] sm:$0xff]  }
  0xf8   : > { %v432_v60 = vadd.f32 %v2104_v56, %v2605_v41  ;;  %v423_v61 = vpop.f32.mrb[5].mxu0  ;;  %v518_v62 = vpack.c.bf16 %v503_v58, %v502_v57  ;;  %2160 = vmatprep.subr.bf16.mxu0 %v2358_v51 }
  0xf9   : > { %v424_v63 = vadd.f32 %v2605_v41, %v423_v61  ;;  %v2105_v0 = vpop.f32.mrb[6].mxu0  ;;  %2161 = vmatpush3.bf16.msra.mxu0 %v2358_v51 }
  0xfa   : > { %vm476_vm5 = vcmp.ge.f32.partialorder %v432_v60, 0.0  ;;  %v492_v1 = vmul.f32 0.01, %v432_v60  ;;  %v435_v2 = vadd.f32 %v2105_v0, %v2605_v41  ;;  %v426_v3 = vpop.f32.mrb[7].mxu0  ;;  %2130 = vmatprep.mubr.bf16.mxu1 %v518_v62 }
  0xfb   : > { %vm474_vm6 = vcmp.ge.f32.partialorder %v424_v63, 0.0  ;;  %v490_v4 = vmul.f32 0.01, %v424_v63  ;;  %v427_v5 = vadd.f32 %v2605_v41, %v426_v3  ;;  %2131 = vmatmul.mubr.bf16.vlgmr.msra.gmra.mrb[0].mxu1 %v519_v59 }
  0xfc   : > { %vm477_vm7 = vcmp.ge.f32.partialorder %v435_v2, 0.0  ;;  %v493_v6 = vmul.f32 0.01, %v435_v2  ;;  %v508_v7 = vsel %vm476_vm5, %v432_v60, %v492_v1 }
  0xfd   : > { %vm475_vm8 = vcmp.ge.f32.partialorder %v427_v5, 0.0  ;;  %v491_v8 = vmul.f32 0.01, %v427_v5  ;;  %v506_v9 = vsel %vm474_vm6, %v424_v63, %v490_v4 }
  0xfe   : > { %v509_v10 = vsel %vm477_vm7, %v435_v2, %v493_v6 }
  0xff   : > { %v2108_v11 = vpop.f32.mrb[8].mxu0  ;;  %v507_v12 = vsel %vm475_vm8, %v427_v5, %v491_v8  ;;  %v521_v13 = vpack.c.bf16 %v509_v10, %v508_v7 }
 0x100   : > { %v448_v14 = vadd.f32 %v2108_v11, %v2605_v41  ;;  %v520_v15 = vpack.c.bf16 %v507_v12, %v506_v9  ;;  %v439_v16 = vpop.f32.mrb[9].mxu0 }
 0x101   : > { %v440_v17 = vadd.f32 %v2605_v41, %v439_v16  ;;  %v2109_v18 = vpop.f32.mrb[10].mxu0 }
 0x102   : > { %vm480_vm9 = vcmp.ge.f32.partialorder %v448_v14, 0.0  ;;  %v496_v19 = vmul.f32 0.01, %v448_v14  ;;  %2134 = vmatprep.mubr.bf16.mxu1 %v520_v15  ;;  %v451_v20 = vadd.f32 %v2109_v18, %v2605_v41  ;;  %v442_v21 = vpop.f32.mrb[11].mxu0 }
 0x103   : > { %vm478_vm10 = vcmp.ge.f32.partialorder %v440_v17, 0.0  ;;  %v494_v22 = vmul.f32 0.01, %v440_v17  ;;  %2135 = vmatmul.mubr.bf16.gmra.mrb[4].mxu1 %v521_v13  ;;  %v443_v23 = vadd.f32 %v2605_v41, %v442_v21 }
 0x104   : > { %vm481_vm11 = vcmp.ge.f32.partialorder %v451_v20, 0.0  ;;  %v497_v24 = vmul.f32 0.01, %v451_v20  ;;  %v512_v25 = vsel %vm480_vm9, %v448_v14, %v496_v19 }
 0x105   : > { %vm479_vm12 = vcmp.ge.f32.partialorder %v443_v23, 0.0  ;;  %v495_v26 = vmul.f32 0.01, %v443_v23  ;;  %v510_v27 = vsel %vm478_vm10, %v440_v17, %v494_v22 }
 0x106   : > { %v513_v28 = vsel %vm481_vm11, %v451_v20, %v497_v24 }
 0x107   : > { %v511_v29 = vsel %vm479_vm12, %v443_v23, %v495_v26  ;;  %v523_v30 = vpack.c.bf16 %v513_v28, %v512_v25  ;;  %v2112_v31 = vpop.f32.mrb[12].mxu0 }
 0x108   : > { %v522_v32 = vpack.c.bf16 %v511_v29, %v510_v27  ;;  %v464_v33 = vadd.f32 %v2112_v31, %v2605_v41  ;;  %v455_v34 = vpop.f32.mrb[13].mxu0 }
 0x109   : > { %v456_v35 = vadd.f32 %v2605_v41, %v455_v34  ;;  %v2113_v36 = vpop.f32.mrb[14].mxu0 }
 0x10a   : > { %2138 = vmatprep.mubr.bf16.mxu1 %v522_v32  ;;  %vm484_vm13 = vcmp.ge.f32.partialorder %v464_v33, 0.0  ;;  %v500_v37 = vmul.f32 0.01, %v464_v33  ;;  %v467_v38 = vadd.f32 %v2113_v36, %v2605_v41  ;;  %v458_v39 = vpop.f32.mrb[15].mxu0 }
 0x10b   : > { %2139 = vmatmul.mubr.bf16.gmra.mrb[8].mxu1 %v523_v30  ;;  %vm482_vm14 = vcmp.ge.f32.partialorder %v456_v35, 0.0  ;;  %v498_v40 = vmul.f32 0.01, %v456_v35  ;;  %v459_v42 = vadd.f32 %v2605_v41, %v458_v39 }
 0x10c   : > { %vm485_vm15 = vcmp.ge.f32.partialorder %v467_v38, 0.0  ;;  %v501_v43 = vmul.f32 0.01, %v467_v38  ;;  %v516_v44 = vsel %vm484_vm13, %v464_v33, %v500_v37 }
 0x10d   : > { %vm483_vm0 = vcmp.ge.f32.partialorder %v459_v42, 0.0  ;;  %v499_v45 = vmul.f32 0.01, %v459_v42  ;;  %v514_v46 = vsel %vm482_vm14, %v456_v35, %v498_v40 }
 0x10e   : > { %v517_v47 = vsel %vm485_vm15, %v467_v38, %v501_v43 }
 0x10f   : > { %v515_v48 = vsel %vm483_vm0, %v459_v42, %v499_v45  ;;  %v525_v49 = vpack.c.bf16 %v517_v47, %v516_v44 }
 0x110   : > { %v524_v50 = vpack.c.bf16 %v515_v48, %v514_v46 }
 0x112   : > { %2142 = vmatprep.mubr.bf16.mxu1 %v524_v50 }
 0x113   : > { %2143 = vmatmul.mubr.bf16.gmra.mrb[12].mxu1 %v525_v49 }
 0x1ce   : > { %v2132_v41 = vpop.f32.mrb[0].mxu1 }
 0x1cf   : > { %v1989_v52 = vpack.c.bf16 %v2132_v41, %v2132_v41  ;;  %v624_v53 = vpop.f32.mrb[1].mxu1 }
 0x1d0   : > { %v1987_v54 = vpack.c.bf16 %v624_v53, %v624_v53  ;;  %v2133_v55 = vpop.f32.mrb[2].mxu1 }
 0x1d1   : > { %v688_v56 = vpack.c.bf16 %v2133_v55, %v2132_v41  ;;  %v1990_v57 = vpack.c.bf16 %v2133_v55, %v2133_v55  ;;  %v627_v58 = vpop.f32.mrb[3].mxu1  ;;  %v2226_v59 = vpack.i.bf16 %v2133_v55, %v2132_v41  ;;  %1267 = vst.msk [vmem:[%s2630_s21 + $0x8] sm:$0xf] %vm1264_vm1, %v1989_v52 }
 0x1d2   : > { %v1988_v60 = vpack.c.bf16 %v627_v58, %v627_v58  ;;  %v687_v61 = vpack.c.bf16 %v627_v58, %v624_v53  ;;  %v2236_v62 = vpack.i.bf16 %v627_v58, %v624_v53  ;;  %1265 = vst.msk [vmem:[%s2630_s21] sm:$0xf] %vm1264_vm1, %v1987_v54 }
 0x1d3   : > { %2227 = vrot.lane.b32.xlu1 %v2226_v59, %s2423_s23  ;;  %2222 = vrot.lane.b32.xlu0 %v2226_v59, %s2424_s29  ;;  %1268 = vst.msk [vmem:[%s2630_s21 + $0xc] sm:$0xf] %vm1264_vm1, %v1990_v57 }
 0x1d4   : > { %2162 = vmatprep.mubr.bf16.mxu0 %v687_v61  ;;  %1266 = vst.msk [vmem:[%s2630_s21 + $0x4] sm:$0xf] %vm1264_vm1, %v1988_v60 }
 0x1d5   : > { %2163 = vmatmul.mubr.bf16.vlgmr.msra.gmra.mrb[16].mxu0 %v688_v56 }
 0x1d6   : > { %v2136_v63 = vpop.f32.mrb[4].mxu1 }
 0x1d7   : > { %v1993_v0 = vpack.c.bf16 %v2136_v63, %v2136_v63  ;;  %2232 = vrot.lane.b32.xlu1 %v2226_v59, %s2425_s9  ;;  %2237 = vrot.lane.b32.xlu0 %v2236_v62, %s2424_s29  ;;  %v640_v1 = vpop.f32.mrb[5].mxu1 }
 0x1d8   : > { %v1991_v2 = vpack.c.bf16 %v640_v1, %v640_v1  ;;  %v2137_v3 = vpop.f32.mrb[6].mxu1 }
 0x1d9   : > { %v1994_v4 = vpack.c.bf16 %v2137_v3, %v2137_v3  ;;  %v643_v5 = vpop.f32.mrb[7].mxu1  ;;  %v2251_v6 = vpack.i.bf16 %v2137_v3, %v2136_v63  ;;  %v690_v7 = vpack.c.bf16 %v2137_v3, %v2136_v63  ;;  %1271 = vst.msk [vmem:[%s2630_s21 + $0x18] sm:$0xf] %vm1264_vm1, %v1993_v0 }
 0x1da   : > { %v1992_v8 = vpack.c.bf16 %v643_v5, %v643_v5  ;;  %v689_v9 = vpack.c.bf16 %v643_v5, %v640_v1  ;;  %v2271_v10 = vpack.i.bf16 %v643_v5, %v640_v1  ;;  %1269 = vst.msk [vmem:[%s2630_s21 + $0x10] sm:$0xf] %vm1264_vm1, %v1991_v2 }
 0x1db   : > { %2242 = vrot.lane.b32.xlu0 %v2236_v62, %s2423_s23  ;;  %2252 = vrot.lane.b32.xlu1 %v2251_v6, %s2424_s29  ;;  %1272 = vst.msk [vmem:[%s2630_s21 + $0x1c] sm:$0xf] %vm1264_vm1, %v1994_v4 }
 0x1dc   : > { %2166 = vmatprep.mubr.bf16.mxu0 %v689_v9  ;;  %1270 = vst.msk [vmem:[%s2630_s21 + $0x14] sm:$0xf] %vm1264_vm1, %v1992_v8 }
 0x1dd   : > { %2167 = vmatmul.mubr.bf16.gmra.mrb[20].mxu0 %v690_v7 }
 0x1de   : > { %v2140_v11 = vpop.f32.mrb[8].mxu1 }
 0x1df   : > { %2247 = vrot.lane.b32.xlu0 %v2236_v62, %s2425_s9  ;;  %2257 = vrot.lane.b32.xlu1 %v2251_v6, %s2423_s23  ;;  %v1997_v12 = vpack.c.bf16 %v2140_v11, %v2140_v11  ;;  %v656_v13 = vpop.f32.mrb[9].mxu1 }
 0x1e0   : > { %v1995_v14 = vpack.c.bf16 %v656_v13, %v656_v13  ;;  %v2141_v15 = vpop.f32.mrb[10].mxu1 }
 0x1e1   : > { %v1998_v16 = vpack.c.bf16 %v2141_v15, %v2141_v15  ;;  %v659_v17 = vpop.f32.mrb[11].mxu1  ;;  %v692_v18 = vpack.c.bf16 %v2141_v15, %v2140_v11  ;;  %v2281_v19 = vpack.i.bf16 %v2141_v15, %v2140_v11  ;;  %1275 = vst.msk [vmem:[%s2630_s21 + $0x28] sm:$0xf] %vm1264_vm1, %v1997_v12 }
 0x1e2   : > { %v1996_v20 = vpack.c.bf16 %v659_v17, %v659_v17  ;;  %v691_v21 = vpack.c.bf16 %v659_v17, %v656_v13  ;;  %v2296_v22 = vpack.i.bf16 %v659_v17, %v656_v13  ;;  %1273 = vst.msk [vmem:[%s2630_s21 + $0x20] sm:$0xf] %vm1264_vm1, %v1995_v14 }
 0x1e3   : > { %2262 = vrot.lane.b32.xlu1 %v2251_v6, %s2425_s9  ;;  %2272 = vrot.lane.b32.xlu0 %v2271_v10, %s2423_s23  ;;  %1276 = vst.msk [vmem:[%s2630_s21 + $0x2c] sm:$0xf] %vm1264_vm1, %v1998_v16 }
 0x1e4   : > { %2170 = vmatprep.mubr.bf16.mxu0 %v691_v21  ;;  %1274 = vst.msk [vmem:[%s2630_s21 + $0x24] sm:$0xf] %vm1264_vm1, %v1996_v20 }
 0x1e5   : > { %2171 = vmatmul.mubr.bf16.gmra.mrb[24].mxu0 %v692_v18 }
 0x1e6   : > { %v2144_v23 = vpop.f32.mrb[12].mxu1 }
 0x1e7   : > { %2277 = vrot.lane.b32.xlu0 %v2271_v10, %s2425_s9  ;;  %2267 = vrot.lane.b32.xlu1 %v2271_v10, %s2424_s29  ;;  %v2001_v24 = vpack.c.bf16 %v2144_v23, %v2144_v23  ;;  %v672_v25 = vpop.f32.mrb[13].mxu1 }
 0x1e8   : > { %v1999_v26 = vpack.c.bf16 %v672_v25, %v672_v25  ;;  %v2145_v27 = vpop.f32.mrb[14].mxu1 }
 0x1e9   : > { %v2002_v28 = vpack.c.bf16 %v2145_v27, %v2145_v27  ;;  %v675_v29 = vpop.f32.mrb[15].mxu1  ;;  %v2311_v30 = vpack.i.bf16 %v2145_v27, %v2144_v23  ;;  %v694_v31 = vpack.c.bf16 %v2145_v27, %v2144_v23  ;;  %1279 = vst.msk [vmem:[%s2630_s21 + $0x38] sm:$0xf] %vm1264_vm1, %v2001_v24 }
 0x1ea   : > { %v2000_v32 = vpack.c.bf16 %v675_v29, %v675_v29  ;;  %v2326_v33 = vpack.i.bf16 %v675_v29, %v672_v25  ;;  %v693_v34 = vpack.c.bf16 %v675_v29, %v672_v25  ;;  %1277 = vst.msk [vmem:[%s2630_s21 + $0x30] sm:$0xf] %vm1264_vm1, %v1999_v26 }
 0x1eb   : > { %2282 = vrot.lane.b32.xlu1 %v2281_v19, %s2424_s29  ;;  %2297 = vrot.lane.b32.xlu0 %v2296_v22, %s2424_s29  ;;  %1280 = vst.msk [vmem:[%s2630_s21 + $0x3c] sm:$0xf] %vm1264_vm1, %v2002_v28 }
 0x1ec   : > { %2174 = vmatprep.mubr.bf16.mxu0 %v693_v34  ;;  %1278 = vst.msk [vmem:[%s2630_s21 + $0x34] sm:$0xf] %vm1264_vm1, %v2000_v32 }
 0x1ed   : > { %2175 = vmatmul.mubr.bf16.gmra.mrb[28].mxu0 %v694_v31 }
 0x1ef   : > { %2287 = vrot.lane.b32.xlu1 %v2281_v19, %s2423_s23  ;;  %2302 = vrot.lane.b32.xlu0 %v2296_v22, %s2423_s23 }
 0x1f3   : > { %2292 = vrot.lane.b32.xlu1 %v2281_v19, %s2425_s9  ;;  %2307 = vrot.lane.b32.xlu0 %v2296_v22, %s2425_s9 }
 0x1f7   : > { %2312 = vrot.lane.b32.xlu1 %v2311_v30, %s2424_s29  ;;  %2327 = vrot.lane.b32.xlu0 %v2326_v33, %s2424_s29  ;;  %s2853_s29 = scalar_lea.vmem (%p2506_p5), %s2957_s5, %s2051_s18 }
 0x1fb   : > { %2317 = vrot.lane.b32.xlu1 %v2311_v30, %s2423_s23  ;;  %2332 = vrot.lane.b32.xlu0 %v2326_v33, %s2423_s23 }
 0x1ff   : > { %2322 = vrot.lane.b32.xlu1 %v2311_v30, %s2425_s9  ;;  %2337 = vrot.lane.b32.xlu0 %v2326_v33, %s2425_s9 }
 0x245   : > { %v2228_v35 = vpop.permute.xlu1 %2227  ;;  %v2223_v36 = vpop.permute.xlu0 %2222 }
 0x246   : > { %v2230_v37 = vunpack.i.h.bf16 %v2228_v35  ;;  %v2229_v38 = vunpack.i.l.bf16 %v2228_v35  ;;  %v2225_v39 = vunpack.i.h.bf16 %v2223_v36  ;;  %v2224_v40 = vunpack.i.l.bf16 %v2223_v36 }
 0x248   : > { %v2022_v42 = vpack.c.bf16 %v2230_v37, %v2230_v37  ;;  %v2021_v43 = vpack.c.bf16 %v2229_v38, %v2229_v38  ;;  %v2006_v44 = vpack.c.bf16 %v2225_v39, %v2225_v39  ;;  %v2005_v45 = vpack.c.bf16 %v2224_v40, %v2224_v40 }
 0x249   : > { %v2233_v46 = vpop.permute.xlu1 %2232  ;;  %v2238_v47 = vpop.permute.xlu0 %2237 }
 0x24a   : > { %v2235_v48 = vunpack.i.h.bf16 %v2233_v46  ;;  %v2234_v49 = vunpack.i.l.bf16 %v2233_v46  ;;  %v2240_v50 = vunpack.i.h.bf16 %v2238_v47  ;;  %v2239_v51 = vunpack.i.l.bf16 %v2238_v47  ;;  %1283 = vst.msk [vmem:[%s2630_s21 + $0x48] sm:$0xf] %vm1264_vm1, %v2005_v45  ;;  %1284 = vst.msk [vmem:[%s2630_s21 + $0x4c] sm:$0xf] %vm1264_vm1, %v2006_v44 }
 0x24b   : > { %1299 = vst.msk [vmem:[%s2630_s21 + $0x88] sm:$0xf] %vm1264_vm1, %v2021_v43  ;;  %1300 = vst.msk [vmem:[%s2630_s21 + $0x8c] sm:$0xf] %vm1264_vm1, %v2022_v42 }
 0x24c   : > { %v2038_v41 = vpack.c.bf16 %v2235_v48, %v2235_v48  ;;  %v2037_v52 = vpack.c.bf16 %v2234_v49, %v2234_v49  ;;  %v2004_v53 = vpack.c.bf16 %v2240_v50, %v2240_v50  ;;  %v2003_v54 = vpack.c.bf16 %v2239_v51, %v2239_v51 }
 0x24d   : > { %v2243_v55 = vpop.permute.xlu0 %2242  ;;  %v2253_v56 = vpop.permute.xlu1 %2252 }
 0x24e   : > { %v2245_v57 = vunpack.i.h.bf16 %v2243_v55  ;;  %v2244_v58 = vunpack.i.l.bf16 %v2243_v55  ;;  %v2255_v59 = vunpack.i.h.bf16 %v2253_v56  ;;  %v2254_v60 = vunpack.i.l.bf16 %v2253_v56  ;;  %1281 = vst.msk [vmem:[%s2630_s21 + $0x40] sm:$0xf] %vm1264_vm1, %v2003_v54  ;;  %1282 = vst.msk [vmem:[%s2630_s21 + $0x44] sm:$0xf] %vm1264_vm1, %v2004_v53 }
 0x24f   : > { %1315 = vst.msk [vmem:[%s2630_s21 + $0xc8] sm:$0xf] %vm1264_vm1, %v2037_v52  ;;  %1316 = vst.msk [vmem:[%s2630_s21 + $0xcc] sm:$0xf] %vm1264_vm1, %v2038_v41 }
 0x250   : > { %v2020_v61 = vpack.c.bf16 %v2245_v57, %v2245_v57  ;;  %v2019_v62 = vpack.c.bf16 %v2244_v58, %v2244_v58  ;;  %v2010_v63 = vpack.c.bf16 %v2255_v59, %v2255_v59  ;;  %v2009_v0 = vpack.c.bf16 %v2254_v60, %v2254_v60 }
 0x251   : > { %v2248_v1 = vpop.permute.xlu0 %2247  ;;  %v2258_v2 = vpop.permute.xlu1 %2257 }
 0x252   : > { %v2250_v3 = vunpack.i.h.bf16 %v2248_v1  ;;  %v2249_v4 = vunpack.i.l.bf16 %v2248_v1  ;;  %v2260_v5 = vunpack.i.h.bf16 %v2258_v2  ;;  %v2259_v6 = vunpack.i.l.bf16 %v2258_v2  ;;  %1287 = vst.msk [vmem:[%s2630_s21 + $0x58] sm:$0xf] %vm1264_vm1, %v2009_v0  ;;  %1288 = vst.msk [vmem:[%s2630_s21 + $0x5c] sm:$0xf] %vm1264_vm1, %v2010_v63 }
 0x253   : > { %1297 = vst.msk [vmem:[%s2630_s21 + $0x80] sm:$0xf] %vm1264_vm1, %v2019_v62  ;;  %1298 = vst.msk [vmem:[%s2630_s21 + $0x84] sm:$0xf] %vm1264_vm1, %v2020_v61 }
 0x254   : > { %v2036_v7 = vpack.c.bf16 %v2250_v3, %v2250_v3  ;;  %v2035_v8 = vpack.c.bf16 %v2249_v4, %v2249_v4  ;;  %v2026_v9 = vpack.c.bf16 %v2260_v5, %v2260_v5  ;;  %v2025_v10 = vpack.c.bf16 %v2259_v6, %v2259_v6 }
 0x255   : > { %v2263_v11 = vpop.permute.xlu1 %2262  ;;  %v2273_v12 = vpop.permute.xlu0 %2272 }
 0x256   : > { %v2265_v13 = vunpack.i.h.bf16 %v2263_v11  ;;  %v2264_v14 = vunpack.i.l.bf16 %v2263_v11  ;;  %v2275_v15 = vunpack.i.h.bf16 %v2273_v12  ;;  %v2274_v16 = vunpack.i.l.bf16 %v2273_v12  ;;  %1303 = vst.msk [vmem:[%s2630_s21 + $0x98] sm:$0xf] %vm1264_vm1, %v2025_v10  ;;  %1304 = vst.msk [vmem:[%s2630_s21 + $0x9c] sm:$0xf] %vm1264_vm1, %v2026_v9 }
 0x257   : > { %1313 = vst.msk [vmem:[%s2630_s21 + $0xc0] sm:$0xf] %vm1264_vm1, %v2035_v8  ;;  %1314 = vst.msk [vmem:[%s2630_s21 + $0xc4] sm:$0xf] %vm1264_vm1, %v2036_v7 }
 0x258   : > { %v2042_v17 = vpack.c.bf16 %v2265_v13, %v2265_v13  ;;  %v2041_v18 = vpack.c.bf16 %v2264_v14, %v2264_v14  ;;  %v2024_v19 = vpack.c.bf16 %v2275_v15, %v2275_v15  ;;  %v2023_v20 = vpack.c.bf16 %v2274_v16, %v2274_v16 }
 0x259   : > { %v2278_v21 = vpop.permute.xlu0 %2277  ;;  %v2268_v22 = vpop.permute.xlu1 %2267 }
 0x25a   : > { %v2280_v23 = vunpack.i.h.bf16 %v2278_v21  ;;  %v2279_v24 = vunpack.i.l.bf16 %v2278_v21  ;;  %v2270_v25 = vunpack.i.h.bf16 %v2268_v22  ;;  %v2269_v26 = vunpack.i.l.bf16 %v2268_v22  ;;  %1301 = vst.msk [vmem:[%s2630_s21 + $0x90] sm:$0xf] %vm1264_vm1, %v2023_v20  ;;  %1302 = vst.msk [vmem:[%s2630_s21 + $0x94] sm:$0xf] %vm1264_vm1, %v2024_v19 }
 0x25b   : > { %1319 = vst.msk [vmem:[%s2630_s21 + $0xd8] sm:$0xf] %vm1264_vm1, %v2041_v18  ;;  %1320 = vst.msk [vmem:[%s2630_s21 + $0xdc] sm:$0xf] %vm1264_vm1, %v2042_v17 }
 0x25c   : > { %v2040_v27 = vpack.c.bf16 %v2280_v23, %v2280_v23  ;;  %v2039_v28 = vpack.c.bf16 %v2279_v24, %v2279_v24  ;;  %v2008_v29 = vpack.c.bf16 %v2270_v25, %v2270_v25  ;;  %v2007_v30 = vpack.c.bf16 %v2269_v26, %v2269_v26 }
 0x25d   : > { %v2283_v31 = vpop.permute.xlu1 %2282  ;;  %v2298_v32 = vpop.permute.xlu0 %2297 }
 0x25e   : > { %v2285_v33 = vunpack.i.h.bf16 %v2283_v31  ;;  %v2284_v34 = vunpack.i.l.bf16 %v2283_v31  ;;  %v2300_v35 = vunpack.i.h.bf16 %v2298_v32  ;;  %v2299_v36 = vunpack.i.l.bf16 %v2298_v32  ;;  %1285 = vst.msk [vmem:[%s2630_s21 + $0x50] sm:$0xf] %vm1264_vm1, %v2007_v30  ;;  %1286 = vst.msk [vmem:[%s2630_s21 + $0x54] sm:$0xf] %vm1264_vm1, %v2008_v29 }
 0x25f   : > { %1317 = vst.msk [vmem:[%s2630_s21 + $0xd0] sm:$0xf] %vm1264_vm1, %v2039_v28  ;;  %1318 = vst.msk [vmem:[%s2630_s21 + $0xd4] sm:$0xf] %vm1264_vm1, %v2040_v27 }
 0x260   : > { %v2014_v37 = vpack.c.bf16 %v2285_v33, %v2285_v33  ;;  %v2013_v38 = vpack.c.bf16 %v2284_v34, %v2284_v34  ;;  %v2012_v39 = vpack.c.bf16 %v2300_v35, %v2300_v35  ;;  %v2011_v40 = vpack.c.bf16 %v2299_v36, %v2299_v36 }
 0x261   : > { %v2288_v42 = vpop.permute.xlu1 %2287  ;;  %v2303_v43 = vpop.permute.xlu0 %2302 }
 0x262   : > { %v2290_v44 = vunpack.i.h.bf16 %v2288_v42  ;;  %v2289_v45 = vunpack.i.l.bf16 %v2288_v42  ;;  %v2305_v46 = vunpack.i.h.bf16 %v2303_v43  ;;  %v2304_v47 = vunpack.i.l.bf16 %v2303_v43  ;;  %1289 = vst.msk [vmem:[%s2630_s21 + $0x60] sm:$0xf] %vm1264_vm1, %v2011_v40  ;;  %1290 = vst.msk [vmem:[%s2630_s21 + $0x64] sm:$0xf] %vm1264_vm1, %v2012_v39 }
 0x263   : > { %1291 = vst.msk [vmem:[%s2630_s21 + $0x68] sm:$0xf] %vm1264_vm1, %v2013_v38  ;;  %1292 = vst.msk [vmem:[%s2630_s21 + $0x6c] sm:$0xf] %vm1264_vm1, %v2014_v37 }
 0x264   : > { %v2030_v48 = vpack.c.bf16 %v2290_v44, %v2290_v44  ;;  %v2029_v49 = vpack.c.bf16 %v2289_v45, %v2289_v45  ;;  %v2028_v50 = vpack.c.bf16 %v2305_v46, %v2305_v46  ;;  %v2027_v51 = vpack.c.bf16 %v2304_v47, %v2304_v47 }
 0x265   : > { %v2293_v41 = vpop.permute.xlu1 %2292  ;;  %v2308_v52 = vpop.permute.xlu0 %2307 }
 0x266   : > { %v2295_v53 = vunpack.i.h.bf16 %v2293_v41  ;;  %v2294_v54 = vunpack.i.l.bf16 %v2293_v41  ;;  %v2310_v55 = vunpack.i.h.bf16 %v2308_v52  ;;  %v2309_v56 = vunpack.i.l.bf16 %v2308_v52  ;;  %1305 = vst.msk [vmem:[%s2630_s21 + $0xa0] sm:$0xf] %vm1264_vm1, %v2027_v51  ;;  %1306 = vst.msk [vmem:[%s2630_s21 + $0xa4] sm:$0xf] %vm1264_vm1, %v2028_v50 }
 0x267   : > { %1307 = vst.msk [vmem:[%s2630_s21 + $0xa8] sm:$0xf] %vm1264_vm1, %v2029_v49  ;;  %1308 = vst.msk [vmem:[%s2630_s21 + $0xac] sm:$0xf] %vm1264_vm1, %v2030_v48 }
 0x268   : > { %v2046_v57 = vpack.c.bf16 %v2295_v53, %v2295_v53  ;;  %v2045_v58 = vpack.c.bf16 %v2294_v54, %v2294_v54  ;;  %v2044_v59 = vpack.c.bf16 %v2310_v55, %v2310_v55  ;;  %v2043_v60 = vpack.c.bf16 %v2309_v56, %v2309_v56 }
 0x269   : > { %v2313_v61 = vpop.permute.xlu1 %2312  ;;  %v2328_v62 = vpop.permute.xlu0 %2327 }
 0x26a   : > { %v2315_v63 = vunpack.i.h.bf16 %v2313_v61  ;;  %v2314_v0 = vunpack.i.l.bf16 %v2313_v61  ;;  %v2330_v1 = vunpack.i.h.bf16 %v2328_v62  ;;  %v2329_v2 = vunpack.i.l.bf16 %v2328_v62  ;;  %1321 = vst.msk [vmem:[%s2630_s21 + $0xe0] sm:$0xf] %vm1264_vm1, %v2043_v60  ;;  %1322 = vst.msk [vmem:[%s2630_s21 + $0xe4] sm:$0xf] %vm1264_vm1, %v2044_v59  ;;  %v1478_v60 = vld [vmem:[%s2630_s21] sm:$0xff] (%p2506_p5)   ;;  %v1482_v61 = vld [vmem:[%s2630_s21 + $0x8] sm:$0xff] (%p2506_p5)  }
 0x26b   : > { %1323 = vst.msk [vmem:[%s2630_s21 + $0xe8] sm:$0xf] %vm1264_vm1, %v2045_v58  ;;  %1324 = vst.msk [vmem:[%s2630_s21 + $0xec] sm:$0xf] %vm1264_vm1, %v2046_v57  ;;  %v1486_v62 = vld [vmem:[%s2630_s21 + $0x10] sm:$0xff] (%p2506_p5)  }
 0x26c   : > { %v2018_v3 = vpack.c.bf16 %v2315_v63, %v2315_v63  ;;  %v2017_v4 = vpack.c.bf16 %v2314_v0, %v2314_v0  ;;  %v2016_v5 = vpack.c.bf16 %v2330_v1, %v2330_v1  ;;  %v2015_v6 = vpack.c.bf16 %v2329_v2, %v2329_v2  ;;  %v1490_v63 = vld [vmem:[%s2630_s21 + $0x18] sm:$0xff] (%p2506_p5)   ;;  %v1494_v0 = vld [vmem:[%s2630_s21 + $0x20] sm:$0xff] (%p2506_p5)   ;;  %v1498_v1 = vld [vmem:[%s2630_s21 + $0x28] sm:$0xff] (%p2506_p5)   ;;  %1479 = vst [vmem:[%s2853_s29] sm:$0xff] (%p2506_p5), %v1478_v60  }
 0x26d   : > { %v2318_v7 = vpop.permute.xlu1 %2317  ;;  %v2333_v8 = vpop.permute.xlu0 %2332  ;;  %1483 = vst [vmem:[%s2853_s29 + $0x8] sm:$0xff] (%p2506_p5), %v1482_v61   ;;  %1487 = vst [vmem:[%s2853_s29 + $0x10] sm:$0xff] (%p2506_p5), %v1486_v62   ;;  %v1502_v2 = vld [vmem:[%s2630_s21 + $0x30] sm:$0xff] (%p2506_p5)  }
 0x26e   : > { %v2320_v9 = vunpack.i.h.bf16 %v2318_v7  ;;  %v2319_v10 = vunpack.i.l.bf16 %v2318_v7  ;;  %v2335_v11 = vunpack.i.h.bf16 %v2333_v8  ;;  %v2334_v12 = vunpack.i.l.bf16 %v2333_v8  ;;  %1293 = vst.msk [vmem:[%s2630_s21 + $0x70] sm:$0xf] %vm1264_vm1, %v2015_v6  ;;  %1294 = vst.msk [vmem:[%s2630_s21 + $0x74] sm:$0xf] %vm1264_vm1, %v2016_v5  ;;  %v1514_v5 = vld [vmem:[%s2630_s21 + $0x48] sm:$0xff] (%p2506_p5)   ;;  %v1518_v6 = vld [vmem:[%s2630_s21 + $0x50] sm:$0xff] (%p2506_p5)  }
 0x26f   : > { %1295 = vst.msk [vmem:[%s2630_s21 + $0x78] sm:$0xf] %vm1264_vm1, %v2017_v4  ;;  %1296 = vst.msk [vmem:[%s2630_s21 + $0x7c] sm:$0xf] %vm1264_vm1, %v2018_v3  ;;  %v1506_v3 = vld [vmem:[%s2630_s21 + $0x38] sm:$0xff] (%p2506_p5)   ;;  %v1510_v4 = vld [vmem:[%s2630_s21 + $0x40] sm:$0xff] (%p2506_p5)  }
 0x270   : > { %v2034_v13 = vpack.c.bf16 %v2320_v9, %v2320_v9  ;;  %v2033_v14 = vpack.c.bf16 %v2319_v10, %v2319_v10  ;;  %v2032_v15 = vpack.c.bf16 %v2335_v11, %v2335_v11  ;;  %v2031_v16 = vpack.c.bf16 %v2334_v12, %v2334_v12  ;;  %1491 = vst [vmem:[%s2853_s29 + $0x18] sm:$0xff] (%p2506_p5), %v1490_v63   ;;  %v1522_v7 = vld [vmem:[%s2630_s21 + $0x58] sm:$0xff] (%p2506_p5)   ;;  %v1526_v8 = vld [vmem:[%s2630_s21 + $0x60] sm:$0xff] (%p2506_p5)   ;;  %v1530_v9 = vld [vmem:[%s2630_s21 + $0x68] sm:$0xff] (%p2506_p5)  }
 0x271   : > { %v2323_v17 = vpop.permute.xlu1 %2322  ;;  %v2338_v18 = vpop.permute.xlu0 %2337  ;;  %1495 = vst [vmem:[%s2853_s29 + $0x20] sm:$0xff] (%p2506_p5), %v1494_v0   ;;  %1499 = vst [vmem:[%s2853_s29 + $0x28] sm:$0xff] (%p2506_p5), %v1498_v1   ;;  %v1542_v12 = vld [vmem:[%s2630_s21 + $0x80] sm:$0xff] (%p2506_p5)  }
 0x272   : > { %v2325_v19 = vunpack.i.h.bf16 %v2323_v17  ;;  %v2324_v20 = vunpack.i.l.bf16 %v2323_v17  ;;  %v2340_v21 = vunpack.i.h.bf16 %v2338_v18  ;;  %v2339_v22 = vunpack.i.l.bf16 %v2338_v18  ;;  %1309 = vst.msk [vmem:[%s2630_s21 + $0xb0] sm:$0xf] %vm1264_vm1, %v2031_v16  ;;  %1310 = vst.msk [vmem:[%s2630_s21 + $0xb4] sm:$0xf] %vm1264_vm1, %v2032_v15  ;;  %v1554_v15 = vld [vmem:[%s2630_s21 + $0x98] sm:$0xff] (%p2506_p5)   ;;  %v1558_v16 = vld [vmem:[%s2630_s21 + $0xa0] sm:$0xff] (%p2506_p5)  }
 0x273   : > { %1311 = vst.msk [vmem:[%s2630_s21 + $0xb8] sm:$0xf] %vm1264_vm1, %v2033_v14  ;;  %1312 = vst.msk [vmem:[%s2630_s21 + $0xbc] sm:$0xf] %vm1264_vm1, %v2034_v13  ;;  %v1546_v13 = vld [vmem:[%s2630_s21 + $0x88] sm:$0xff] (%p2506_p5)   ;;  %v1550_v14 = vld [vmem:[%s2630_s21 + $0x90] sm:$0xff] (%p2506_p5)  }
 0x274   : > { %v2050_v23 = vpack.c.bf16 %v2325_v19, %v2325_v19  ;;  %v2049_v24 = vpack.c.bf16 %v2324_v20, %v2324_v20  ;;  %v2048_v25 = vpack.c.bf16 %v2340_v21, %v2340_v21  ;;  %v2047_v26 = vpack.c.bf16 %v2339_v22, %v2339_v22  ;;  %1503 = vst [vmem:[%s2853_s29 + $0x30] sm:$0xff] (%p2506_p5), %v1502_v2   ;;  %v1562_v17 = vld [vmem:[%s2630_s21 + $0xa8] sm:$0xff] (%p2506_p5)   ;;  %v1574_v20 = vld [vmem:[%s2630_s21 + $0xc0] sm:$0xff] (%p2506_p5)   ;;  %v1582_v22 = vld [vmem:[%s2630_s21 + $0xd0] sm:$0xff] (%p2506_p5)  }
 0x275   : > { %1507 = vst [vmem:[%s2853_s29 + $0x38] sm:$0xff] (%p2506_p5), %v1506_v3   ;;  %1511 = vst [vmem:[%s2853_s29 + $0x80] sm:$0xff] (%p2506_p5), %v1510_v4   ;;  %v1534_v10 = vld [vmem:[%s2630_s21 + $0x70] sm:$0xff] (%p2506_p5)   ;;  %v1578_v21 = vld [vmem:[%s2630_s21 + $0xc8] sm:$0xff] (%p2506_p5)  }
 0x276   : > { %1325 = vst.msk [vmem:[%s2630_s21 + $0xf0] sm:$0xf] %vm1264_vm1, %v2047_v26  ;;  %1326 = vst.msk [vmem:[%s2630_s21 + $0xf4] sm:$0xf] %vm1264_vm1, %v2048_v25  ;;  %v1538_v11 = vld [vmem:[%s2630_s21 + $0x78] sm:$0xff] (%p2506_p5)   ;;  %v1594_v25 = vld [vmem:[%s2630_s21 + $0xe8] sm:$0xff] (%p2506_p5)  }
 0x277   : > { %1327 = vst.msk [vmem:[%s2630_s21 + $0xf8] sm:$0xf] %vm1264_vm1, %v2049_v24  ;;  %1328 = vst.msk [vmem:[%s2630_s21 + $0xfc] sm:$0xf] %vm1264_vm1, %v2050_v23  ;;  %v1586_v23 = vld [vmem:[%s2630_s21 + $0xd8] sm:$0xff] (%p2506_p5)   ;;  %v1590_v24 = vld [vmem:[%s2630_s21 + $0xe0] sm:$0xff] (%p2506_p5)  }
 0x278   : > { %1515 = vst [vmem:[%s2853_s29 + $0x88] sm:$0xff] (%p2506_p5), %v1514_v5   ;;  %1519 = vst [vmem:[%s2853_s29 + $0x90] sm:$0xff] (%p2506_p5), %v1518_v6  }
 0x279   : > { %1523 = vst [vmem:[%s2853_s29 + $0x98] sm:$0xff] (%p2506_p5), %v1522_v7   ;;  %1527 = vst [vmem:[%s2853_s29 + $0xa0] sm:$0xff] (%p2506_p5), %v1526_v8   ;;  %v1566_v18 = vld [vmem:[%s2630_s21 + $0xb0] sm:$0xff] (%p2506_p5)  }
 0x27a   : > { %1531 = vst [vmem:[%s2853_s29 + $0xa8] sm:$0xff] (%p2506_p5), %v1530_v9   ;;  %1535 = vst [vmem:[%s2853_s29 + $0xb0] sm:$0xff] (%p2506_p5), %v1534_v10   ;;  %v1570_v19 = vld [vmem:[%s2630_s21 + $0xb8] sm:$0xff] (%p2506_p5)  }
 0x27b   : > { %1539 = vst [vmem:[%s2853_s29 + $0xb8] sm:$0xff] (%p2506_p5), %v1538_v11   ;;  %1543 = vst [vmem:[%s2853_s29 + $0x100] sm:$0xff] (%p2506_p5), %v1542_v12  }
 0x27c   : > { %1547 = vst [vmem:[%s2853_s29 + $0x108] sm:$0xff] (%p2506_p5), %v1546_v13   ;;  %1551 = vst [vmem:[%s2853_s29 + $0x110] sm:$0xff] (%p2506_p5), %v1550_v14  }
 0x27d   : > { %1555 = vst [vmem:[%s2853_s29 + $0x118] sm:$0xff] (%p2506_p5), %v1554_v15   ;;  %1559 = vst [vmem:[%s2853_s29 + $0x120] sm:$0xff] (%p2506_p5), %v1558_v16   ;;  %v1598_v26 = vld [vmem:[%s2630_s21 + $0xf0] sm:$0xff] (%p2506_p5)  }
 0x27e   : > { %1563 = vst [vmem:[%s2853_s29 + $0x128] sm:$0xff] (%p2506_p5), %v1562_v17   ;;  %1567 = vst [vmem:[%s2853_s29 + $0x130] sm:$0xff] (%p2506_p5), %v1566_v18  }
 0x27f   : > { %1571 = vst [vmem:[%s2853_s29 + $0x138] sm:$0xff] (%p2506_p5), %v1570_v19   ;;  %1575 = vst [vmem:[%s2853_s29 + $0x180] sm:$0xff] (%p2506_p5), %v1574_v20  }
 0x280   : > { %1579 = vst [vmem:[%s2853_s29 + $0x188] sm:$0xff] (%p2506_p5), %v1578_v21   ;;  %1583 = vst [vmem:[%s2853_s29 + $0x190] sm:$0xff] (%p2506_p5), %v1582_v22  }
 0x281   : > { %1587 = vst [vmem:[%s2853_s29 + $0x198] sm:$0xff] (%p2506_p5), %v1586_v23   ;;  %1591 = vst [vmem:[%s2853_s29 + $0x1a0] sm:$0xff] (%p2506_p5), %v1590_v24  }
 0x282   : > { %1595 = vst [vmem:[%s2853_s29 + $0x1a8] sm:$0xff] (%p2506_p5), %v1594_v25   ;;  %1599 = vst [vmem:[%s2853_s29 + $0x1b0] sm:$0xff] (%p2506_p5), %v1598_v26  }
 0x2a8   : > { %v2164_v27 = vpop.f32.mrb[16].mxu0 }
 0x2a9   : > { %v793_v28 = vpop.f32.mrb[17].mxu0  ;;  %1382 = vrot.lane.b32.xlu1 %v2164_v27, %s2426_s8 }
 0x2aa   : > { %v2165_v29 = vpop.f32.mrb[18].mxu0  ;;  %1329 = vxpose.xlu0.b32.start [1/16] (narrow) %v793_v28, 8 }
 0x2ab   : > { %v796_v30 = vpop.f32.mrb[19].mxu0 }
 0x2ad   : > { %1378 = vrot.lane.b32.xlu1 %v793_v28, %s2426_s8 }
 0x2ae   : > { %1330 = vxpose.xlu0.b32.cont [2/16] (narrow) %v796_v30, 8 }
 0x2b0   : > { %v2168_v31 = vpop.f32.mrb[20].mxu0 }
 0x2b1   : > { %v809_v32 = vpop.f32.mrb[21].mxu0  ;;  %1384 = vrot.lane.b32.xlu1 %v2165_v29, %s2426_s8 }
 0x2b2   : > { %v2169_v33 = vpop.f32.mrb[22].mxu0  ;;  %1331 = vxpose.xlu0.b32.cont [3/16] (narrow) %v2164_v27, 8  ;;  %v1602_v27 = vld [vmem:[%s2630_s21 + $0xf8] sm:$0xff] (%p2506_p5)  }
 0x2b3   : > { %v812_v34 = vpop.f32.mrb[23].mxu0  ;;  %1603 = vst [vmem:[%s2853_s29 + $0x1b8] sm:$0xff] (%p2506_p5), %v1602_v27  }
 0x2b5   : > { %1380 = vrot.lane.b32.xlu1 %v796_v30, %s2426_s8 }
 0x2b6   : > { %1332 = vxpose.xlu0.b32.cont [4/16] (narrow) %v2165_v29, 8 }
 0x2b8   : > { %v2172_v35 = vpop.f32.mrb[24].mxu0 }
 0x2b9   : > { %1390 = vrot.lane.b32.xlu1 %v2168_v31, %s2426_s8  ;;  %v825_v36 = vpop.f32.mrb[25].mxu0 }
 0x2ba   : > { %1333 = vxpose.xlu0.b32.cont [5/16] (narrow) %v809_v32, 8  ;;  %v2173_v37 = vpop.f32.mrb[26].mxu0 }
 0x2bb   : > { %v828_v38 = vpop.f32.mrb[27].mxu0 }
 0x2bd   : > { %1386 = vrot.lane.b32.xlu1 %v809_v32, %s2426_s8 }
 0x2be   : > { %1334 = vxpose.xlu0.b32.cont [6/16] (narrow) %v812_v34, 8 }
 0x2c0   : > { %v2176_v39 = vpop.f32.mrb[28].mxu0 }
 0x2c1   : > { %1392 = vrot.lane.b32.xlu1 %v2169_v33, %s2426_s8  ;;  %v841_v40 = vpop.f32.mrb[29].mxu0 }
 0x2c2   : > { %1335 = vxpose.xlu0.b32.cont [7/16] (narrow) %v2168_v31, 8  ;;  %v2177_v42 = vpop.f32.mrb[30].mxu0 }
 0x2c3   : > { %v844_v43 = vpop.f32.mrb[31].mxu0 }
 0x2c5   : > { %1388 = vrot.lane.b32.xlu1 %v812_v34, %s2426_s8 }
 0x2c6   : > { %1336 = vxpose.xlu0.b32.cont [8/16] (narrow) %v2169_v33, 8 }
 0x2c9   : > { %1398 = vrot.lane.b32.xlu1 %v2172_v35, %s2426_s8 }
 0x2ca   : > { %1337 = vxpose.xlu0.b32.cont [9/16] (narrow) %v825_v36, 8 }
 0x2cd   : > { %1394 = vrot.lane.b32.xlu1 %v825_v36, %s2426_s8 }
 0x2ce   : > { %1338 = vxpose.xlu0.b32.cont [10/16] (narrow) %v828_v38, 8 }
 0x2d1   : > { %1400 = vrot.lane.b32.xlu1 %v2173_v37, %s2426_s8 }
 0x2d2   : > { %1339 = vxpose.xlu0.b32.cont [11/16] (narrow) %v2172_v35, 8 }
 0x2d5   : > { %1396 = vrot.lane.b32.xlu1 %v828_v38, %s2426_s8 }
 0x2d6   : > { %1340 = vxpose.xlu0.b32.cont [12/16] (narrow) %v2173_v37, 8 }
 0x2d9   : > { %1406 = vrot.lane.b32.xlu1 %v2176_v39, %s2426_s8 }
 0x2da   : > { %1341 = vxpose.xlu0.b32.cont [13/16] (narrow) %v841_v40, 8 }
 0x2dd   : > { %1402 = vrot.lane.b32.xlu1 %v841_v40, %s2426_s8 }
 0x2de   : > { %1342 = vxpose.xlu0.b32.cont [14/16] (narrow) %v844_v43, 8 }
 0x2e1   : > { %1404 = vrot.lane.b32.xlu1 %v844_v43, %s2426_s8 }
 0x2e2   : > { %1343 = vxpose.xlu0.b32.cont [15/16] (narrow) %v2176_v39, 8 }
 0x2e5   : > { %1408 = vrot.lane.b32.xlu1 %v2177_v42, %s2426_s8 }
 0x2e6   : > { %1344 = vxpose.xlu0.b32.end [16/16] (narrow) %v2177_v42, 8 }
 0x31b   : > { %v1383_v44 = vpop.permute.xlu1 %1382 }
 0x31c   : > { %1429 = vst.msk [vmem:[%s2805_s16 + $0x10] sm:$0xff] %vm1426_vm2, %v1383_v44 }
 0x31f   : > { %v1379_v45 = vpop.permute.xlu1 %1378 }
 0x320   : > { %1427 = vst.msk [vmem:[%s2805_s16] sm:$0xff] %vm1426_vm2, %v1379_v45 }
 0x323   : > { %v1385_v46 = vpop.permute.xlu1 %1384 }
 0x324   : > { %1430 = vst.msk [vmem:[%s2805_s16 + $0x18] sm:$0xff] %vm1426_vm2, %v1385_v46 }
 0x327   : > { %v1381_v47 = vpop.permute.xlu1 %1380 }
 0x328   : > { %1428 = vst.msk [vmem:[%s2805_s16 + $0x8] sm:$0xff] %vm1426_vm2, %v1381_v47 }
 0x32a   : > { %v1345_v48 = vpop.trf.xlu0 }
 0x32b   : > { %v1391_v49 = vpop.permute.xlu1 %1390  ;;  %1361 = vst [vmem:[%s2816_s22] sm:$0xf] %v1345_v48 }
 0x32c   : > { %1433 = vst.msk [vmem:[%s2805_s16 + $0x30] sm:$0xff] %vm1426_vm2, %v1391_v49 }
 0x32f   : > { %v1387_v50 = vpop.permute.xlu1 %1386 }
 0x330   : > { %1431 = vst.msk [vmem:[%s2805_s16 + $0x20] sm:$0xff] %vm1426_vm2, %v1387_v50 }
 0x333   : > { %v1393_v51 = vpop.permute.xlu1 %1392 }
 0x334   : > { %1434 = vst.msk [vmem:[%s2805_s16 + $0x38] sm:$0xff] %vm1426_vm2, %v1393_v51 }
 0x337   : > { %v1389_v41 = vpop.permute.xlu1 %1388 }
 0x338   : > { %1432 = vst.msk [vmem:[%s2805_s16 + $0x28] sm:$0xff] %vm1426_vm2, %v1389_v41 }
 0x33b   : > { %v1399_v52 = vpop.permute.xlu1 %1398 }
 0x33c   : > { %1437 = vst.msk [vmem:[%s2805_s16 + $0x50] sm:$0xff] %vm1426_vm2, %v1399_v52 }
 0x33f   : > { %v1395_v53 = vpop.permute.xlu1 %1394 }
 0x340   : > { %1435 = vst.msk [vmem:[%s2805_s16 + $0x40] sm:$0xff] %vm1426_vm2, %v1395_v53 }
 0x343   : > { %v1401_v54 = vpop.permute.xlu1 %1400 }
 0x344   : > { %1438 = vst.msk [vmem:[%s2805_s16 + $0x58] sm:$0xff] %vm1426_vm2, %v1401_v54 }
 0x347   : > { %v1397_v55 = vpop.permute.xlu1 %1396 }
 0x348   : > { %1436 = vst.msk [vmem:[%s2805_s16 + $0x48] sm:$0xff] %vm1426_vm2, %v1397_v55 }
 0x34b   : > { %v1407_v56 = vpop.permute.xlu1 %1406 }
 0x34c   : > { %1441 = vst.msk [vmem:[%s2805_s16 + $0x70] sm:$0xff] %vm1426_vm2, %v1407_v56 }
 0x34f   : > { %v1403_v57 = vpop.permute.xlu1 %1402 }
 0x350   : > { %1439 = vst.msk [vmem:[%s2805_s16 + $0x60] sm:$0xff] %vm1426_vm2, %v1403_v57 }
 0x352   : > { %1459 = sbr.rel (!%p2506_p5) target bundleno = 857 (0x359), region = 44 }
 0x353   : > { %v1405_v58 = vpop.permute.xlu1 %1404 }
 0x354   : > { %1440 = vst.msk [vmem:[%s2805_s16 + $0x68] sm:$0xff] %vm1426_vm2, %v1405_v58 }
 0x357   : > { %v1409_v59 = vpop.permute.xlu1 %1408 }
 0x358   : > { %1442 = vst.msk [vmem:[%s2805_s16 + $0x78] sm:$0xff] %vm1426_vm2, %v1409_v59 }
 0x359 PF: > { %s1984_s9 = sshll.u32 %s2489_s28, 6  ;;  %s1763_s8 = sshll.u32 %s2816_s22, 4  ;;  %s1764_s8 = int_to_ptr.vmem [resolvable:$true] %s1763_s8 }
 0x35a   : > { %s1761_s16 = scalar_lea.hbm %s2958_s6, %s1984_s9  ;;  %s2359_s15 = scalar_lea.vmem %s1764_s8, 64 }
 0x35b   : > { %p2360_p11 = scmp.ne.s32.totalorder %s1764_s8, %s2359_s15  ;;  %s2427_s18 = smov [#allocation3]  }
 0x35c   : > { %s2363_s21 = sshll.u32 %s2427_s18, 4  ;;  %s2364_s21 = int_to_ptr.vmem [resolvable:$false] %s2363_s21 }
 0x35d   : > { %p2361_p12 = pnand %p2360_p11, %p2506_p5  ;;  %s2365_s20 = scalar_lea.vmem %s2364_s21, 128 }
 0x35e   : > { %p2366_p0 = scmp.lt.s32.totalorder %s1764_s8, %s2364_s21  ;;  %p2367_p1 = scmp.lt.s32.totalorder %s2365_s20, %s2359_s15 }
 0x35f   : > { %p2362_p13 = pneg %p2361_p12 }
 0x360   : > { %p2368_p2 = por %p2367_p1, %p2366_p0 }
 0x362   : > { %p2369_p3 = pnand %p2368_p2, %p2362_p13 }
 0x364   : > { %2372 = shalt.err (!%p2369_p3)
}
 0x365   : > { %s2373_s28 = scalar_lea.hbm %s1761_s16, 64  ;;  %s2377_s29 = scalar_lea.hbm %s2958_s6, 128 }
 0x366   : > { %p2374_p4 = scmp.ne.s32.totalorder %s1761_s16, %s2373_s28  ;;  %p2378_p9 = scmp.lt.u32.totalorder %s1761_s16, %s2958_s6 }
 0x367   : > { %p2379_p10 = scmp.lt.u32.totalorder %s2377_s29, %s2373_s28  ;;  %p2381_p12 = scmp.lt.u32.totalorder %s2373_s28, %s1761_s16 }
 0x368   : > { %p2375_p7 = pnand %p2374_p4, %p2506_p5 }
 0x369   : > { %p2380_p11 = por %p2379_p10, %p2378_p9 }
 0x36a   : > { %p2376_p8 = pneg %p2375_p7 }
 0x36b   : > { %p2382_p0 = por %p2381_p12, %p2380_p11 }
 0x36d   : > { %p2383_p13 = pnand %p2382_p0, %p2376_p8 }
 0x36f   : > { %2386 = shalt.err (!%p2383_p13)
}
 0x370   : > { %2178 = dma.vmem_to_hbm [thread:$0]  (%p2506_p5), %s1764_s8, 64, %s1761_s16, %s1448_s17  }
 0x371 PF: > { %p2184_p1 = scmp.ge.s32.totalorder %s2421_s27, 2  ;;  %s1786_s14 = sand.u32 1, %s2409_s24  }
 0x372   : > { %s1787_s15 = scalar_lea.sflag [#allocation4], %s1786_s14 }
 0x373   : > { %p2181_p2 = pnand %p2184_p1, %p2510_p6 }
 0x375   : > { %2404 = dma.done.wait (!%p2181_p2), %s1787_s15, 64  }
 0x376   : > { %2406 = vsyncadd (!%p2181_p2), %s1787_s15, 4294967232  ;;  %p18_p3 = scmp.ge.s32.totalorder %s2493_s30, 4   ;;  %s2962_s24 = smov %s2413_s25 }
 0x377   : > { %s2963_s25 = smov %s2417_s26  ;;  %s2964_s26 = smov %s2504_s10 }
 0x378   : > { %s2965_s27 = smov %s2493_s30  ;;  %20 = sbr.rel (!%p18_p3) target bundleno = 3 (0x3), region = 140 }
 0x37f   :  { %1800 = vsyncpa [#allocation4], 1 }
 0x380   :  { %1802 = vsyncpa [#allocation4 + $0x1], 1 }

</bundles_post_ra>
